<compile_context>
chip_gen: v5e
topology: v5e:2x2
jax: 0.10.0
libtpu: 0.0.40
codegen_flags: <defaults>
</compile_context>

<pallas_src>
import functools

import jax
import jax.numpy as jnp
from jax.experimental import pallas as pl
from jax.experimental.pallas import tpu as pltpu

EPS = 1e-7          # MskCombLoss.eps
CLAMP_MAX = 10.0    # ClampMSELoss.max
LOG_CLAMP = -100.0  # torch BCELoss clamps log terms at -100
WEIGHTS = (1.0, 1.0, 1.0)
_NUM_HEADS = 3


def _cdiv(a, b):
    return -(-a // b)


def _align8_up(n):
    return ((n + 7) // 8) * 8


def _bce_none(x, y):
    # torch.nn.BCELoss(reduction='none'):  -(y*log(x) + (1-y)*log(1-x))
    # refactored as -(log1mx + y*(logx - log1mx))  (one fewer VPU mul/sub).
    # Clamps are applied to the logs BEFORE the multiply -> no 0*(-inf) NaNs.
    logx = jnp.maximum(jnp.log(x), LOG_CLAMP)
    log1mx = jnp.maximum(jnp.log(1.0 - x), LOG_CLAMP)
    return -(log1mx + y * (logx - log1mx))


def _clamp_l1_none(x, y):
    # ClampMSELoss(loss=L1Loss, max=10, reduction=None):
    #   where(y < 10, |x - y|, relu(10 - x))
    return jnp.where(y < CLAMP_MAX, jnp.abs(x - y), jnp.maximum(CLAMP_MAX - x, 0.0))


def _head_loss(h, x, y):
    return _bce_none(x, y) if h < 2 else _clamp_l1_none(x, y)


def _msk_comb_kernel(*args, has_mask, n_rows, tile_m, tiles_per_core,
                     num_tiles, needs_row_mask, num_cores):
    n_per_head = 3 if has_mask else 2
    n_in = _NUM_HEADS * n_per_head
    in_refs = args[:n_in]
    out_ref = args[n_in]
    acc_refs = args[n_in + 1:]

    if num_cores > 1:
        c = pl.program_id(0)        # TensorCore split (v7x only)
        i = pl.program_id(1)        # batch-tile sweep (carries accumulators)
        last_axis = 1
    else:
        c = 0
        i = pl.program_id(0)
        last_axis = 0

    @pl.when(i == 0)
    def _zero():
        for acc in acc_refs:
            acc[...] = jnp.zeros_like(acc)

    def accumulate(mask_rows):
        if mask_rows:
            # Hoisted once per tile (not per head): rows past n_rows belong to
            # the padded part of the edge tile and must not contribute.
            tile_idx = c * tiles_per_core + i
            row_start = tile_idx * tile_m
            local_row = jax.lax.broadcasted_iota(jnp.int32, (tile_m, 1), 0)
            valid = (row_start + local_row) < n_rows          # (tile_m, 1) bool
        acc_i = 0
        for h in range(_NUM_HEADS):
            base = h * n_per_head
            x = in_refs[base][...].astype(jnp.float32)        # upcast after the load
            y = in_refs[base + 1][...].astype(jnp.float32)
            loss = _head_loss(h, x, y)
            if mask_rows:
                # select (not multiply) so NaNs from padded garbage rows are dropped
                loss = jnp.where(valid, loss, 0.0)
            if has_mask:
                m = in_refs[base + 2][...].astype(jnp.float32)
                if mask_rows:
                    m = jnp.where(valid, m, 0.0)
                acc_refs[acc_i][...] += jnp.sum(m * loss, axis=0, keepdims=True)
                acc_refs[acc_i + 1][...] += jnp.sum(m, axis=0, keepdims=True)
                acc_i += 2
            else:
                acc_refs[acc_i][...] += jnp.sum(loss, axis=0, keepdims=True)
                acc_i += 1

    if not needs_row_mask:
        accumulate(mask_rows=False)
    elif num_tiles == 1:
        accumulate(mask_rows=True)
    else:
        # Only the single global edge tile pays for the row-validity selects;
        # every interior tile takes the mask-free fast path.
        is_edge = (c * tiles_per_core + i) == (num_tiles - 1)

        @pl.when(jnp.logical_not(is_edge))
        def _fast():
            accumulate(mask_rows=False)

        @pl.when(is_edge)
        def _edge():
            accumulate(mask_rows=True)

    @pl.when(i == pl.num_programs(last_axis) - 1)
    def _finalize():
        # Pack this core's partial sums into its (1, 8, 128) lane-tile:
        #   [0, 0, h] -> sum(m*loss_h)   (or sum(loss_h) when mask-free)
        #   [0, 1, h] -> sum(m_h)        (masked variant only)
        row = jax.lax.broadcasted_iota(jnp.int32, (1, 8, 128), 1)
        col = jax.lax.broadcasted_iota(jnp.int32, (1, 8, 128), 2)
        vals = jnp.zeros((1, 8, 128), jnp.float32)
        k = 0
        for h in range(_NUM_HEADS):
            num_sum = jnp.sum(acc_refs[k][...])
            vals = jnp.where((row == 0) & (col == h), num_sum, vals)
            k += 1
            if has_mask:
                den_sum = jnp.sum(acc_refs[k][...])
                vals = jnp.where((row == 1) & (col == h), den_sum, vals)
                k += 1
        out_ref[...] = vals


def _device_plan():
    """Returns (num_cores, double-buffered-stream budget, vmem_limit_bytes)."""
    kind = ""
    try:
        kind = jax.devices()[0].device_kind.lower()
    except Exception:
        pass
    if "v7" in kind:
        # 2 TensorCores but only 64 MiB VMEM per TC: stay well under it.
        return 2, 32 * 1024 * 1024, 48 * 1024 * 1024
    # v5e / v6e (and default): single TensorCore, 128 MiB physical VMEM.
    # Bigger tiles are the dominant lever for this HBM-bound kernel.
    return 1, 56 * 1024 * 1024, 96 * 1024 * 1024


def _choose_tile_m(n_rows, args, budget_bytes):
    # Double-buffered input streams dominate the footprint; the (1, C) f32
    # accumulators are negligible now.
    if n_rows <= 8:
        return n_rows                      # block == full dim (allowed)
    bytes_per_row = sum(2 * a.shape[1] * a.dtype.itemsize for a in args)
    tm = int(budget_bytes // max(bytes_per_row, 1))
    if tm >= n_rows:
        return n_rows                      # single full-extent tile, no edge masking
    return max(8, (tm // 8) * 8)


def msk_comb_loss(inputs, targets, masks=None, weights=WEIGHTS, eps=EPS, tile_m=None):
    """inputs/targets: lists of 3 (batch, classes) arrays (any float dtype).
    masks: None (default torch path) or list of 3 arrays shaped like inputs."""
    assert len(inputs) == _NUM_HEADS and len(targets) == _NUM_HEADS
    has_mask = masks is not None

    n_rows = inputs[0].shape[0]
    for x, y in zip(inputs, targets):
        assert x.ndim == 2 and y.shape == x.shape and x.shape[0] == n_rows

    # Native-dtype inputs: no wrapper-side casts, no materialized all-ones masks.
    args = []
    for h in range(_NUM_HEADS):
        args.append(inputs[h])
        args.append(targets[h])
        if has_mask:
            assert masks[h].shape == inputs[h].shape
            args.append(masks[h])

    num_cores, budget, vmem_limit = _device_plan()

    tile_m_given = tile_m is not None
    if not tile_m_given:
        tile_m = _choose_tile_m(n_rows, args, budget)
    tile_m = min(tile_m, n_rows)
    assert tile_m == n_rows or tile_m % 8 == 0

    num_tiles = _cdiv(n_rows, tile_m)

    # Phantom-tile elimination: only split across cores when the tile count
    # divides evenly (re-derive tile_m if possible, else run on one core).
    if num_cores > 1:
        if num_tiles < num_cores:
            num_cores = 1
        elif num_tiles % num_cores != 0:
            if tile_m_given:
                num_cores = 1
            else:
                alt_tm = _align8_up(_cdiv(n_rows, num_tiles + 1))
                alt_tiles = _cdiv(n_rows, alt_tm)
                if alt_tiles >= num_cores and alt_tiles % num_cores == 0:
                    tile_m, num_tiles = alt_tm, alt_tiles
                else:
                    num_cores = 1

    def run(ncores):
        tiles_per_core = num_tiles // ncores
        needs_row_mask = (num_tiles * tile_m) != n_rows

        if ncores > 1:
            grid = (ncores, tiles_per_core)
            in_map = lambda c, i: (c * tiles_per_core + i, 0)
            out_map = lambda c, i: (c, 0, 0)
            semantics = (pltpu.CORE_PARALLEL, pltpu.ARBITRARY)   # shard axis 0 over TCs
        else:
            grid = (tiles_per_core,)
            in_map = lambda i: (i, 0)
            out_map = lambda i: (0, 0, 0)
            semantics = (pltpu.ARBITRARY,)

        in_specs = [pl.BlockSpec((tile_m, a.shape[1]), in_map) for a in args]
        out_spec = pl.BlockSpec((1, 8, 128), out_map)

        scratch = []
        for h in range(_NUM_HEADS):
            scratch.append(pltpu.VMEM((1, inputs[h].shape[1]), jnp.float32))
            if has_mask:
                scratch.append(pltpu.VMEM((1, inputs[h].shape[1]), jnp.float32))

        kernel = functools.partial(
            _msk_comb_kernel, has_mask=has_mask, n_rows=n_rows, tile_m=tile_m,
            tiles_per_core=tiles_per_core, num_tiles=num_tiles,
            needs_row_mask=needs_row_mask, num_cores=ncores)

        return pl.pallas_call(
            kernel,
            out_shape=jax.ShapeDtypeStruct((ncores, 8, 128), jnp.float32),
            grid=grid,
            in_specs=in_specs,
            out_specs=out_spec,
            scratch_shapes=scratch,
            compiler_params=pltpu.CompilerParams(
                dimension_semantics=semantics,
                vmem_limit_bytes=vmem_limit),
        )(*args)

    if num_cores > 1:
        try:
            out = run(num_cores)
        except Exception:
            # Safety net (eager mode): if this backend rejects the explicit
            # cross-core split, the single sequential grid is always valid.
            out = run(1)
    else:
        out = run(1)

    # Finalize with tiny scalar XLA math: combine per-core partials, turn sums
    # into means and apply weights / (eps + mean(mask)).
    counts = jnp.array([n_rows * x.shape[1] for x in inputs], jnp.float32)
    num_sums = out[:, 0, :_NUM_HEADS].sum(axis=0)
    if has_mask:
        den_means = out[:, 1, :_NUM_HEADS].sum(axis=0) / counts
    else:
        den_means = jnp.ones((_NUM_HEADS,), jnp.float32)   # torch int-mask == 1 path
    terms = jnp.asarray(weights, jnp.float32) * (num_sums / counts) / (eps + den_means)
    return jnp.sum(terms)


def _reference(inputs, targets, masks=None, weights=WEIGHTS, eps=EPS):
    # Pure-JAX reference of the torch module (uses the literal torch BCE form).
    total = 0.0
    for h in range(_NUM_HEADS):
        x = inputs[h].astype(jnp.float32)
        y = targets[h].astype(jnp.float32)
        if h < 2:
            logx = jnp.maximum(jnp.log(x), LOG_CLAMP)
            log1mx = jnp.maximum(jnp.log(1.0 - x), LOG_CLAMP)
            loss = -(y * logx + (1.0 - y) * log1mx)
        else:
            loss = jnp.where(y < CLAMP_MAX, jnp.abs(x - y),
                             jnp.maximum(CLAMP_MAX - x, 0.0))
        if masks is None:
            total = total + weights[h] * jnp.mean(loss) / (eps + 1.0)
        else:
            m = masks[h].astype(jnp.float32)
            total = total + weights[h] * jnp.mean(m * loss) / (eps + jnp.mean(m))
    return total


if __name__ == "__main__":
    key = jax.random.PRNGKey(0)
    ks = jax.random.split(key, 12)

    # Case 1: mask=None path, f32, ragged batch (partial edge tile + multi-tile sweep).
    B1, C1 = 20, 128
    x0 = jax.nn.sigmoid(jax.random.normal(ks[0], (B1, C1), jnp.float32))
    y0 = jax.random.uniform(ks[1], (B1, C1), jnp.float32)
    x1 = jax.nn.sigmoid(jax.random.normal(ks[2], (B1, C1), jnp.float32))
    y1 = jax.random.uniform(ks[3], (B1, C1), jnp.float32)
    x2 = jax.random.uniform(ks[4], (B1, C1), jnp.float32, minval=0.0, maxval=12.0)
    y2 = jax.random.uniform(ks[5], (B1, C1), jnp.float32, minval=0.0, maxval=20.0)
    inputs1, targets1 = [x0, x1, x2], [y0, y1, y2]

    out1 = jax.block_until_ready(msk_comb_loss(inputs1, targets1, masks=None, tile_m=8))
    ref1 = jax.block_until_ready(_reference(inputs1, targets1, masks=None))
    assert jnp.allclose(out1, ref1, rtol=1e-5, atol=1e-5), (out1, ref1)

    # Case 2: masked path, native bf16, even tile count (2-core split on v7x).
    B2, C2 = 32, 256
    xb0 = jax.nn.sigmoid(jax.random.normal(ks[6], (B2, C2), jnp.float32)).astype(jnp.bfloat16)
    yb0 = jax.random.uniform(ks[7], (B2, C2), jnp.float32).astype(jnp.bfloat16)
    xb1 = jax.nn.sigmoid(jax.random.normal(ks[8], (B2, C2), jnp.float32)).astype(jnp.bfloat16)
    yb1 = jax.random.uniform(ks[9], (B2, C2), jnp.float32).astype(jnp.bfloat16)
    xb2 = jax.random.uniform(ks[10], (B2, C2), jnp.float32, minval=0.0, maxval=12.0).astype(jnp.bfloat16)
    yb2 = jax.random.uniform(ks[11], (B2, C2), jnp.float32, minval=0.0, maxval=20.0).astype(jnp.bfloat16)
    mkeys = jax.random.split(jax.random.PRNGKey(1), _NUM_HEADS)
    masks2 = [(jax.random.uniform(mkeys[h], (B2, C2)) > 0.3).astype(jnp.bfloat16)
              for h in range(_NUM_HEADS)]
    inputs2, targets2 = [xb0, xb1, xb2], [yb0, yb1, yb2]

    out2 = jax.block_until_ready(msk_comb_loss(inputs2, targets2, masks=masks2, tile_m=16))
    ref2 = jax.block_until_ready(_reference(inputs2, targets2, masks=masks2))
    assert jnp.allclose(out2, ref2, rtol=1e-4, atol=1e-4), (out2, ref2)

    # Case 3: masked path, f32, auto tile selection (single full-extent tile).
    B3, C3 = 40, 64
    ks3 = jax.random.split(jax.random.PRNGKey(2), 9)
    inputs3 = [jax.nn.sigmoid(jax.random.normal(ks3[0], (B3, C3), jnp.float32)),
               jax.nn.sigmoid(jax.random.normal(ks3[1], (B3, C3), jnp.float32)),
               jax.random.uniform(ks3[2], (B3, C3), jnp.float32, minval=0.0, maxval=12.0)]
    targets3 = [jax.random.uniform(ks3[3], (B3, C3), jnp.float32),
                jax.random.uniform(ks3[4], (B3, C3), jnp.float32),
                jax.random.uniform(ks3[5], (B3, C3), jnp.float32, minval=0.0, maxval=20.0)]
    masks3 = [(jax.random.uniform(ks3[6 + h], (B3, C3)) > 0.5).astype(jnp.float32)
              for h in range(_NUM_HEADS)]

    out3 = jax.block_until_ready(msk_comb_loss(inputs3, targets3, masks=masks3))
    ref3 = jax.block_until_ready(_reference(inputs3, targets3, masks=masks3))
    assert jnp.allclose(out3, ref3, rtol=1e-5, atol=1e-5), (out3, ref3)

    print("KERNEL_OK")
</pallas_src>

<mosaic_0001>
module attributes {stable_mosaic.version = 11 : i64} {
  func.func @_msk_comb_kernel(%arg0: i32, %arg1: memref<8x128xf32, #tpu.memory_space<vmem>>, %arg2: memref<8x128xf32, #tpu.memory_space<vmem>>, %arg3: memref<8x128xf32, #tpu.memory_space<vmem>>, %arg4: memref<8x128xf32, #tpu.memory_space<vmem>>, %arg5: memref<8x128xf32, #tpu.memory_space<vmem>>, %arg6: memref<8x128xf32, #tpu.memory_space<vmem>>, %arg7: memref<1x8x128xf32, #tpu.memory_space<vmem>>, %arg8: memref<1x128xf32, #tpu.memory_space<vmem>>, %arg9: memref<1x128xf32, #tpu.memory_space<vmem>>, %arg10: memref<1x128xf32, #tpu.memory_space<vmem>>) attributes {dimension_semantics = [#tpu.dimension_semantics<arbitrary>], iteration_bounds = array<i64: 3>, scalar_prefetch = 0 : i64, scratch_operands = 3 : i64, tpu.core_type = #tpu.core_type<tc>, window_params = [{transform_indices = @transform_0, window_bounds = array<i64: 8, 128>}, {transform_indices = @transform_1, window_bounds = array<i64: 8, 128>}, {transform_indices = @transform_2, window_bounds = array<i64: 8, 128>}, {transform_indices = @transform_3, window_bounds = array<i64: 8, 128>}, {transform_indices = @transform_4, window_bounds = array<i64: 8, 128>}, {transform_indices = @transform_5, window_bounds = array<i64: 8, 128>}, {pipeline_mode = #tpu.pipeline_mode<synchronous>, transform_indices = @transform_6, window_bounds = array<i64: 1, 8, 128>}]} {
    %c0_i32 = arith.constant 0 : i32
    %0 = arith.cmpi eq, %arg0, %c0_i32 : i32
    %1 = arith.extui %0 : i1 to i32
    %c0_i32_0 = arith.constant 0 : i32
    %2 = arith.cmpi ne, %1, %c0_i32_0 : i32
    scf.if %2 {
      %cst = arith.constant 0.000000e+00 : f32
      %13 = vector.broadcast %cst : f32 to vector<1x128xf32>
      %c0 = arith.constant 0 : index
      %c0_6 = arith.constant 0 : index
      %14 = vector.load %arg8[%c0, %c0_6] : memref<1x128xf32, #tpu.memory_space<vmem>>, vector<1x128xf32>
      tpu.vector_store %arg8[%c0, %c0_6], %13 {strides = array<i32>} : memref<1x128xf32, #tpu.memory_space<vmem>>, vector<1x128xf32>,
      %cst_7 = arith.constant 0.000000e+00 : f32
      %15 = vector.broadcast %cst_7 : f32 to vector<1x128xf32>
      %c0_8 = arith.constant 0 : index
      %c0_9 = arith.constant 0 : index
      %16 = vector.load %arg9[%c0_8, %c0_9] : memref<1x128xf32, #tpu.memory_space<vmem>>, vector<1x128xf32>
      tpu.vector_store %arg9[%c0_8, %c0_9], %15 {strides = array<i32>} : memref<1x128xf32, #tpu.memory_space<vmem>>, vector<1x128xf32>,
      %cst_10 = arith.constant 0.000000e+00 : f32
      %17 = vector.broadcast %cst_10 : f32 to vector<1x128xf32>
      %c0_11 = arith.constant 0 : index
      %c0_12 = arith.constant 0 : index
      %18 = vector.load %arg10[%c0_11, %c0_12] : memref<1x128xf32, #tpu.memory_space<vmem>>, vector<1x128xf32>
      tpu.vector_store %arg10[%c0_11, %c0_12], %17 {strides = array<i32>} : memref<1x128xf32, #tpu.memory_space<vmem>>, vector<1x128xf32>,
    } else {
    }
    %c0_i32_1 = arith.constant 0 : i32
    %3 = arith.addi %c0_i32_1, %arg0 : i32
    %c2_i32 = arith.constant 2 : i32
    %4 = arith.cmpi eq, %3, %c2_i32 : i32
    %true = arith.constant true
    %5 = arith.xori %4, %true : i1
    %6 = arith.extui %5 : i1 to i32
    %c0_i32_2 = arith.constant 0 : i32
    %7 = arith.cmpi ne, %6, %c0_i32_2 : i32
    scf.if %7 {
      %c0 = arith.constant 0 : index
      %c0_6 = arith.constant 0 : index
      %13 = vector.load %arg1[%c0, %c0_6] : memref<8x128xf32, #tpu.memory_space<vmem>>, vector<8x128xf32>
      %c0_7 = arith.constant 0 : index
      %c0_8 = arith.constant 0 : index
      %14 = vector.load %arg2[%c0_7, %c0_8] : memref<8x128xf32, #tpu.memory_space<vmem>>, vector<8x128xf32>
      %15 = math.log %13 : vector<8x128xf32>
      %cst = arith.constant -1.000000e+02 : f32
      %16 = vector.broadcast %cst : f32 to vector<8x128xf32>
      %17 = arith.maximumf %15, %16 : vector<8x128xf32>
      %cst_9 = arith.constant 1.000000e+00 : f32
      %18 = vector.broadcast %cst_9 : f32 to vector<8x128xf32>
      %19 = arith.subf %18, %13 : vector<8x128xf32>
      %20 = math.log %19 : vector<8x128xf32>
      %cst_10 = arith.constant -1.000000e+02 : f32
      %21 = vector.broadcast %cst_10 : f32 to vector<8x128xf32>
      %22 = arith.maximumf %20, %21 : vector<8x128xf32>
      %23 = arith.subf %17, %22 : vector<8x128xf32>
      %24 = arith.mulf %14, %23 : vector<8x128xf32>
      %25 = arith.addf %22, %24 : vector<8x128xf32>
      %cst_11 = arith.constant 0.000000e+00 : f32
      %26 = vector.broadcast %cst_11 : f32 to vector<8x128xf32>
      %27 = arith.subf %26, %25 : vector<8x128xf32>
      %c0_12 = arith.constant 0 : index
      %c0_13 = arith.constant 0 : index
      %28 = vector.load %arg8[%c0_12, %c0_13] : memref<1x128xf32, #tpu.memory_space<vmem>>, vector<1x128xf32>
      %cst_14 = arith.constant dense<0.000000e+00> : vector<128xf32>
      %29 = vector.multi_reduction <add>, %27, %cst_14 [0] : vector<8x128xf32> to vector<128xf32>
      %30 = vector.shape_cast %29 : vector<128xf32> to vector<1x128xf32>
      %31 = arith.addf %28, %30 : vector<1x128xf32>
      %c0_15 = arith.constant 0 : index
      %c0_16 = arith.constant 0 : index
      %32 = vector.load %arg8[%c0_15, %c0_16] : memref<1x128xf32, #tpu.memory_space<vmem>>, vector<1x128xf32>
      tpu.vector_store %arg8[%c0_15, %c0_16], %31 {strides = array<i32>} : memref<1x128xf32, #tpu.memory_space<vmem>>, vector<1x128xf32>,
      %c0_17 = arith.constant 0 : index
      %c0_18 = arith.constant 0 : index
      %33 = vector.load %arg3[%c0_17, %c0_18] : memref<8x128xf32, #tpu.memory_space<vmem>>, vector<8x128xf32>
      %c0_19 = arith.constant 0 : index
      %c0_20 = arith.constant 0 : index
      %34 = vector.load %arg4[%c0_19, %c0_20] : memref<8x128xf32, #tpu.memory_space<vmem>>, vector<8x128xf32>
      %35 = math.log %33 : vector<8x128xf32>
      %cst_21 = arith.constant -1.000000e+02 : f32
      %36 = vector.broadcast %cst_21 : f32 to vector<8x128xf32>
      %37 = arith.maximumf %35, %36 : vector<8x128xf32>
      %cst_22 = arith.constant 1.000000e+00 : f32
      %38 = vector.broadcast %cst_22 : f32 to vector<8x128xf32>
      %39 = arith.subf %38, %33 : vector<8x128xf32>
      %40 = math.log %39 : vector<8x128xf32>
      %cst_23 = arith.constant -1.000000e+02 : f32
      %41 = vector.broadcast %cst_23 : f32 to vector<8x128xf32>
      %42 = arith.maximumf %40, %41 : vector<8x128xf32>
      %43 = arith.subf %37, %42 : vector<8x128xf32>
      %44 = arith.mulf %34, %43 : vector<8x128xf32>
      %45 = arith.addf %42, %44 : vector<8x128xf32>
      %cst_24 = arith.constant 0.000000e+00 : f32
      %46 = vector.broadcast %cst_24 : f32 to vector<8x128xf32>
      %47 = arith.subf %46, %45 : vector<8x128xf32>
      %c0_25 = arith.constant 0 : index
      %c0_26 = arith.constant 0 : index
      %48 = vector.load %arg9[%c0_25, %c0_26] : memref<1x128xf32, #tpu.memory_space<vmem>>, vector<1x128xf32>
      %cst_27 = arith.constant dense<0.000000e+00> : vector<128xf32>
      %49 = vector.multi_reduction <add>, %47, %cst_27 [0] : vector<8x128xf32> to vector<128xf32>
      %50 = vector.shape_cast %49 : vector<128xf32> to vector<1x128xf32>
      %51 = arith.addf %48, %50 : vector<1x128xf32>
      %c0_28 = arith.constant 0 : index
      %c0_29 = arith.constant 0 : index
      %52 = vector.load %arg9[%c0_28, %c0_29] : memref<1x128xf32, #tpu.memory_space<vmem>>, vector<1x128xf32>
      tpu.vector_store %arg9[%c0_28, %c0_29], %51 {strides = array<i32>} : memref<1x128xf32, #tpu.memory_space<vmem>>, vector<1x128xf32>,
      %c0_30 = arith.constant 0 : index
      %c0_31 = arith.constant 0 : index
      %53 = vector.load %arg5[%c0_30, %c0_31] : memref<8x128xf32, #tpu.memory_space<vmem>>, vector<8x128xf32>
      %c0_32 = arith.constant 0 : index
      %c0_33 = arith.constant 0 : index
      %54 = vector.load %arg6[%c0_32, %c0_33] : memref<8x128xf32, #tpu.memory_space<vmem>>, vector<8x128xf32>
      %cst_34 = arith.constant 1.000000e+01 : f32
      %55 = vector.broadcast %cst_34 : f32 to vector<8x128xf32>
      %56 = arith.cmpf olt, %54, %55 : vector<8x128xf32>
      %57 = arith.subf %53, %54 : vector<8x128xf32>
      %58 = math.absf %57 : vector<8x128xf32>
      %cst_35 = arith.constant 1.000000e+01 : f32
      %59 = vector.broadcast %cst_35 : f32 to vector<8x128xf32>
      %60 = arith.subf %59, %53 : vector<8x128xf32>
      %cst_36 = arith.constant 0.000000e+00 : f32
      %61 = vector.broadcast %cst_36 : f32 to vector<8x128xf32>
      %62 = arith.maximumf %60, %61 : vector<8x128xf32>
      %63 = arith.select %56, %58, %62 : vector<8x128xi1>, vector<8x128xf32>
      %c0_37 = arith.constant 0 : index
      %c0_38 = arith.constant 0 : index
      %64 = vector.load %arg10[%c0_37, %c0_38] : memref<1x128xf32, #tpu.memory_space<vmem>>, vector<1x128xf32>
      %cst_39 = arith.constant dense<0.000000e+00> : vector<128xf32>
      %65 = vector.multi_reduction <add>, %63, %cst_39 [0] : vector<8x128xf32> to vector<128xf32>
      %66 = vector.shape_cast %65 : vector<128xf32> to vector<1x128xf32>
      %67 = arith.addf %64, %66 : vector<1x128xf32>
      %c0_40 = arith.constant 0 : index
      %c0_41 = arith.constant 0 : index
      %68 = vector.load %arg10[%c0_40, %c0_41] : memref<1x128xf32, #tpu.memory_space<vmem>>, vector<1x128xf32>
      tpu.vector_store %arg10[%c0_40, %c0_41], %67 {strides = array<i32>} : memref<1x128xf32, #tpu.memory_space<vmem>>, vector<1x128xf32>,
    } else {
    }
    %8 = arith.extui %4 : i1 to i32
    %c0_i32_3 = arith.constant 0 : i32
    %9 = arith.cmpi ne, %8, %c0_i32_3 : i32
    scf.if %9 {
      %c0_i32_6 = arith.constant 0 : i32
      %13 = arith.addi %c0_i32_6, %arg0 : i32
      %c8_i32 = arith.constant 8 : i32
      %14 = arith.muli %13, %c8_i32 : i32
      %15 = tpu.iota {dimensions = array<i32: 0>} : vector<8x1xi32>
      %16 = vector.broadcast %14 : i32 to vector<8x1xi32>
      %17 = arith.addi %16, %15 : vector<8x1xi32>
      %c20_i32 = arith.constant 20 : i32
      %18 = vector.broadcast %c20_i32 : i32 to vector<8x1xi32>
      %19 = arith.cmpi slt, %17, %18 : vector<8x1xi32>
      %c0 = arith.constant 0 : index
      %c0_7 = arith.constant 0 : index
      %20 = vector.load %arg1[%c0, %c0_7] : memref<8x128xf32, #tpu.memory_space<vmem>>, vector<8x128xf32>
      %c0_8 = arith.constant 0 : index
      %c0_9 = arith.constant 0 : index
      %21 = vector.load %arg2[%c0_8, %c0_9] : memref<8x128xf32, #tpu.memory_space<vmem>>, vector<8x128xf32>
      %22 = math.log %20 : vector<8x128xf32>
      %cst = arith.constant -1.000000e+02 : f32
      %23 = vector.broadcast %cst : f32 to vector<8x128xf32>
      %24 = arith.maximumf %22, %23 : vector<8x128xf32>
      %cst_10 = arith.constant 1.000000e+00 : f32
      %25 = vector.broadcast %cst_10 : f32 to vector<8x128xf32>
      %26 = arith.subf %25, %20 : vector<8x128xf32>
      %27 = math.log %26 : vector<8x128xf32>
      %cst_11 = arith.constant -1.000000e+02 : f32
      %28 = vector.broadcast %cst_11 : f32 to vector<8x128xf32>
      %29 = arith.maximumf %27, %28 : vector<8x128xf32>
      %30 = arith.subf %24, %29 : vector<8x128xf32>
      %31 = arith.mulf %21, %30 : vector<8x128xf32>
      %32 = arith.addf %29, %31 : vector<8x128xf32>
      %cst_12 = arith.constant 0.000000e+00 : f32
      %33 = vector.broadcast %cst_12 : f32 to vector<8x128xf32>
      %34 = arith.subf %33, %32 : vector<8x128xf32>
      %cst_13 = arith.constant 0.000000e+00 : f32
      %35 = vector.shape_cast %19 : vector<8x1xi1> to vector<8x1xi1>
      %36 = vector.broadcast %35 : vector<8x1xi1> to vector<8x128xi1>
      %37 = vector.broadcast %cst_13 : f32 to vector<8x128xf32>
      %38 = arith.select %36, %34, %37 : vector<8x128xi1>, vector<8x128xf32>
      %c0_14 = arith.constant 0 : index
      %c0_15 = arith.constant 0 : index
      %39 = vector.load %arg8[%c0_14, %c0_15] : memref<1x128xf32, #tpu.memory_space<vmem>>, vector<1x128xf32>
      %cst_16 = arith.constant dense<0.000000e+00> : vector<128xf32>
      %40 = vector.multi_reduction <add>, %38, %cst_16 [0] : vector<8x128xf32> to vector<128xf32>
      %41 = vector.shape_cast %40 : vector<128xf32> to vector<1x128xf32>
      %42 = arith.addf %39, %41 : vector<1x128xf32>
      %c0_17 = arith.constant 0 : index
      %c0_18 = arith.constant 0 : index
      %43 = vector.load %arg8[%c0_17, %c0_18] : memref<1x128xf32, #tpu.memory_space<vmem>>, vector<1x128xf32>
      tpu.vector_store %arg8[%c0_17, %c0_18], %42 {strides = array<i32>} : memref<1x128xf32, #tpu.memory_space<vmem>>, vector<1x128xf32>,
      %c0_19 = arith.constant 0 : index
      %c0_20 = arith.constant 0 : index
      %44 = vector.load %arg3[%c0_19, %c0_20] : memref<8x128xf32, #tpu.memory_space<vmem>>, vector<8x128xf32>
      %c0_21 = arith.constant 0 : index
      %c0_22 = arith.constant 0 : index
      %45 = vector.load %arg4[%c0_21, %c0_22] : memref<8x128xf32, #tpu.memory_space<vmem>>, vector<8x128xf32>
      %46 = math.log %44 : vector<8x128xf32>
      %cst_23 = arith.constant -1.000000e+02 : f32
      %47 = vector.broadcast %cst_23 : f32 to vector<8x128xf32>
      %48 = arith.maximumf %46, %47 : vector<8x128xf32>
      %cst_24 = arith.constant 1.000000e+00 : f32
      %49 = vector.broadcast %cst_24 : f32 to vector<8x128xf32>
      %50 = arith.subf %49, %44 : vector<8x128xf32>
      %51 = math.log %50 : vector<8x128xf32>
      %cst_25 = arith.constant -1.000000e+02 : f32
      %52 = vector.broadcast %cst_25 : f32 to vector<8x128xf32>
      %53 = arith.maximumf %51, %52 : vector<8x128xf32>
      %54 = arith.subf %48, %53 : vector<8x128xf32>
      %55 = arith.mulf %45, %54 : vector<8x128xf32>
      %56 = arith.addf %53, %55 : vector<8x128xf32>
      %cst_26 = arith.constant 0.000000e+00 : f32
      %57 = vector.broadcast %cst_26 : f32 to vector<8x128xf32>
      %58 = arith.subf %57, %56 : vector<8x128xf32>
      %cst_27 = arith.constant 0.000000e+00 : f32
      %59 = vector.shape_cast %19 : vector<8x1xi1> to vector<8x1xi1>
      %60 = vector.broadcast %59 : vector<8x1xi1> to vector<8x128xi1>
      %61 = vector.broadcast %cst_27 : f32 to vector<8x128xf32>
      %62 = arith.select %60, %58, %61 : vector<8x128xi1>, vector<8x128xf32>
      %c0_28 = arith.constant 0 : index
      %c0_29 = arith.constant 0 : index
      %63 = vector.load %arg9[%c0_28, %c0_29] : memref<1x128xf32, #tpu.memory_space<vmem>>, vector<1x128xf32>
      %cst_30 = arith.constant dense<0.000000e+00> : vector<128xf32>
      %64 = vector.multi_reduction <add>, %62, %cst_30 [0] : vector<8x128xf32> to vector<128xf32>
      %65 = vector.shape_cast %64 : vector<128xf32> to vector<1x128xf32>
      %66 = arith.addf %63, %65 : vector<1x128xf32>
      %c0_31 = arith.constant 0 : index
      %c0_32 = arith.constant 0 : index
      %67 = vector.load %arg9[%c0_31, %c0_32] : memref<1x128xf32, #tpu.memory_space<vmem>>, vector<1x128xf32>
      tpu.vector_store %arg9[%c0_31, %c0_32], %66 {strides = array<i32>} : memref<1x128xf32, #tpu.memory_space<vmem>>, vector<1x128xf32>,
      %c0_33 = arith.constant 0 : index
      %c0_34 = arith.constant 0 : index
      %68 = vector.load %arg5[%c0_33, %c0_34] : memref<8x128xf32, #tpu.memory_space<vmem>>, vector<8x128xf32>
      %c0_35 = arith.constant 0 : index
      %c0_36 = arith.constant 0 : index
      %69 = vector.load %arg6[%c0_35, %c0_36] : memref<8x128xf32, #tpu.memory_space<vmem>>, vector<8x128xf32>
      %cst_37 = arith.constant 1.000000e+01 : f32
      %70 = vector.broadcast %cst_37 : f32 to vector<8x128xf32>
      %71 = arith.cmpf olt, %69, %70 : vector<8x128xf32>
      %72 = arith.subf %68, %69 : vector<8x128xf32>
      %73 = math.absf %72 : vector<8x128xf32>
      %cst_38 = arith.constant 1.000000e+01 : f32
      %74 = vector.broadcast %cst_38 : f32 to vector<8x128xf32>
      %75 = arith.subf %74, %68 : vector<8x128xf32>
      %cst_39 = arith.constant 0.000000e+00 : f32
      %76 = vector.broadcast %cst_39 : f32 to vector<8x128xf32>
      %77 = arith.maximumf %75, %76 : vector<8x128xf32>
      %78 = arith.select %71, %73, %77 : vector<8x128xi1>, vector<8x128xf32>
      %cst_40 = arith.constant 0.000000e+00 : f32
      %79 = vector.shape_cast %19 : vector<8x1xi1> to vector<8x1xi1>
      %80 = vector.broadcast %79 : vector<8x1xi1> to vector<8x128xi1>
      %81 = vector.broadcast %cst_40 : f32 to vector<8x128xf32>
      %82 = arith.select %80, %78, %81 : vector<8x128xi1>, vector<8x128xf32>
      %c0_41 = arith.constant 0 : index
      %c0_42 = arith.constant 0 : index
      %83 = vector.load %arg10[%c0_41, %c0_42] : memref<1x128xf32, #tpu.memory_space<vmem>>, vector<1x128xf32>
      %cst_43 = arith.constant dense<0.000000e+00> : vector<128xf32>
      %84 = vector.multi_reduction <add>, %82, %cst_43 [0] : vector<8x128xf32> to vector<128xf32>
      %85 = vector.shape_cast %84 : vector<128xf32> to vector<1x128xf32>
      %86 = arith.addf %83, %85 : vector<1x128xf32>
      %c0_44 = arith.constant 0 : index
      %c0_45 = arith.constant 0 : index
      %87 = vector.load %arg10[%c0_44, %c0_45] : memref<1x128xf32, #tpu.memory_space<vmem>>, vector<1x128xf32>
      tpu.vector_store %arg10[%c0_44, %c0_45], %86 {strides = array<i32>} : memref<1x128xf32, #tpu.memory_space<vmem>>, vector<1x128xf32>,
    } else {
    }
    %c2_i32_4 = arith.constant 2 : i32
    %10 = arith.cmpi eq, %arg0, %c2_i32_4 : i32
    %11 = arith.extui %10 : i1 to i32
    %c0_i32_5 = arith.constant 0 : i32
    %12 = arith.cmpi ne, %11, %c0_i32_5 : i32
    scf.if %12 {
      %13 = tpu.iota {dimensions = array<i32: 1>} : vector<1x8x128xi32>
      %14 = tpu.iota {dimensions = array<i32: 2>} : vector<1x8x128xi32>
      %cst = arith.constant 0.000000e+00 : f32
      %15 = vector.broadcast %cst : f32 to vector<1x8x128xf32>
      %c0 = arith.constant 0 : index
      %c0_6 = arith.constant 0 : index
      %16 = vector.load %arg8[%c0, %c0_6] : memref<1x128xf32, #tpu.memory_space<vmem>>, vector<1x128xf32>
      %17 = vector.shape_cast %16 : vector<1x128xf32> to vector<1x1x128xf32>
      %cst_7 = arith.constant dense<0.000000e+00> : vector<1xf32>
      %18 = vector.multi_reduction <add>, %17, %cst_7 [1, 2] : vector<1x1x128xf32> to vector<1xf32>
      %19 = vector.shape_cast %18 : vector<1xf32> to vector<1x1x1xf32>
      %20 = vector.extract %19[0, 0, 0] : f32 from vector<1x1x1xf32>
      %c0_i32_8 = arith.constant 0 : i32
      %21 = vector.broadcast %c0_i32_8 : i32 to vector<1x8x128xi32>
      %22 = arith.cmpi eq, %13, %21 : vector<1x8x128xi32>
      %c0_i32_9 = arith.constant 0 : i32
      %23 = vector.broadcast %c0_i32_9 : i32 to vector<1x8x128xi32>
      %24 = arith.cmpi eq, %14, %23 : vector<1x8x128xi32>
      %25 = arith.andi %22, %24 : vector<1x8x128xi1>
      %26 = vector.broadcast %20 : f32 to vector<1x8x128xf32>
      %27 = arith.select %25, %26, %15 : vector<1x8x128xi1>, vector<1x8x128xf32>
      %c0_10 = arith.constant 0 : index
      %c0_11 = arith.constant 0 : index
      %28 = vector.load %arg9[%c0_10, %c0_11] : memref<1x128xf32, #tpu.memory_space<vmem>>, vector<1x128xf32>
      %29 = vector.shape_cast %28 : vector<1x128xf32> to vector<1x1x128xf32>
      %cst_12 = arith.constant dense<0.000000e+00> : vector<1xf32>
      %30 = vector.multi_reduction <add>, %29, %cst_12 [1, 2] : vector<1x1x128xf32> to vector<1xf32>
      %31 = vector.shape_cast %30 : vector<1xf32> to vector<1x1x1xf32>
      %32 = vector.extract %31[0, 0, 0] : f32 from vector<1x1x1xf32>
      %c0_i32_13 = arith.constant 0 : i32
      %33 = vector.broadcast %c0_i32_13 : i32 to vector<1x8x128xi32>
      %34 = arith.cmpi eq, %13, %33 : vector<1x8x128xi32>
      %c1_i32 = arith.constant 1 : i32
      %35 = vector.broadcast %c1_i32 : i32 to vector<1x8x128xi32>
      %36 = arith.cmpi eq, %14, %35 : vector<1x8x128xi32>
      %37 = arith.andi %34, %36 : vector<1x8x128xi1>
      %38 = vector.broadcast %32 : f32 to vector<1x8x128xf32>
      %39 = arith.select %37, %38, %27 : vector<1x8x128xi1>, vector<1x8x128xf32>
      %c0_14 = arith.constant 0 : index
      %c0_15 = arith.constant 0 : index
      %40 = vector.load %arg10[%c0_14, %c0_15] : memref<1x128xf32, #tpu.memory_space<vmem>>, vector<1x128xf32>
      %41 = vector.shape_cast %40 : vector<1x128xf32> to vector<1x1x128xf32>
      %cst_16 = arith.constant dense<0.000000e+00> : vector<1xf32>
      %42 = vector.multi_reduction <add>, %41, %cst_16 [1, 2] : vector<1x1x128xf32> to vector<1xf32>
      %43 = vector.shape_cast %42 : vector<1xf32> to vector<1x1x1xf32>
      %44 = vector.extract %43[0, 0, 0] : f32 from vector<1x1x1xf32>
      %c0_i32_17 = arith.constant 0 : i32
      %45 = vector.broadcast %c0_i32_17 : i32 to vector<1x8x128xi32>
      %46 = arith.cmpi eq, %13, %45 : vector<1x8x128xi32>
      %c2_i32_18 = arith.constant 2 : i32
      %47 = vector.broadcast %c2_i32_18 : i32 to vector<1x8x128xi32>
      %48 = arith.cmpi eq, %14, %47 : vector<1x8x128xi32>
      %49 = arith.andi %46, %48 : vector<1x8x128xi1>
      %50 = vector.broadcast %44 : f32 to vector<1x8x128xf32>
      %51 = arith.select %49, %50, %39 : vector<1x8x128xi1>, vector<1x8x128xf32>
      %c0_19 = arith.constant 0 : index
      %c0_20 = arith.constant 0 : index
      %c0_21 = arith.constant 0 : index
      %52 = vector.load %arg7[%c0_19, %c0_20, %c0_21] : memref<1x8x128xf32, #tpu.memory_space<vmem>>, vector<1x8x128xf32>
      tpu.vector_store %arg7[%c0_19, %c0_20, %c0_21], %51 {strides = array<i32>} : memref<1x8x128xf32, #tpu.memory_space<vmem>>, vector<1x8x128xf32>,
    } else {
    }
    return
  }
  func.func @transform_0(%arg0: i32) -> (i32, i32) {
    %c0_i32 = arith.constant 0 : i32
    %c0_i32_0 = arith.constant 0 : i32
    return %arg0, %c0_i32 : i32, i32
  }
  func.func @transform_1(%arg0: i32) -> (i32, i32) {
    %c0_i32 = arith.constant 0 : i32
    %c0_i32_0 = arith.constant 0 : i32
    return %arg0, %c0_i32 : i32, i32
  }
  func.func @transform_2(%arg0: i32) -> (i32, i32) {
    %c0_i32 = arith.constant 0 : i32
    %c0_i32_0 = arith.constant 0 : i32
    return %arg0, %c0_i32 : i32, i32
  }
  func.func @transform_3(%arg0: i32) -> (i32, i32) {
    %c0_i32 = arith.constant 0 : i32
    %c0_i32_0 = arith.constant 0 : i32
    return %arg0, %c0_i32 : i32, i32
  }
  func.func @transform_4(%arg0: i32) -> (i32, i32) {
    %c0_i32 = arith.constant 0 : i32
    %c0_i32_0 = arith.constant 0 : i32
    return %arg0, %c0_i32 : i32, i32
  }
  func.func @transform_5(%arg0: i32) -> (i32, i32) {
    %c0_i32 = arith.constant 0 : i32
    %c0_i32_0 = arith.constant 0 : i32
    return %arg0, %c0_i32 : i32, i32
  }
  func.func @transform_6(%arg0: i32) -> (i32, i32, i32) {
    %c0_i32 = arith.constant 0 : i32
    %c0_i32_0 = arith.constant 0 : i32
    %c0_i32_1 = arith.constant 0 : i32
    %c0_i32_2 = arith.constant 0 : i32
    return %c0_i32, %c0_i32_0, %c0_i32_1 : i32, i32, i32
  }
}

</mosaic_0001>

<bundles_post_ra>
// kernel: tpu_custom_call.1
= control target key start
LH: loop header
LB: loop body
LE: loop exit
PB: predicated region body
PF: predicated region fallthrough
CT: control target
= control target key end

     0   :  { %s1495_s0 = inlined_call_operand.hbm [shape: f32[20,128], index: 0, kind: input, shape index: {}]   ;;  %s1496_s1 = inlined_call_operand.hbm [shape: f32[20,128], index: 1, kind: input, shape index: {}]   ;;  %s1497_s2 = inlined_call_operand.hbm [shape: f32[20,128], index: 2, kind: input, shape index: {}]   ;;  %s1498_s3 = inlined_call_operand.hbm [shape: f32[20,128], index: 3, kind: input, shape index: {}]   ;;  %s1499_s4 = inlined_call_operand.hbm [shape: f32[20,128], index: 4, kind: input, shape index: {}]   ;;  %s1500_s5 = inlined_call_operand.hbm [shape: f32[20,128], index: 5, kind: input, shape index: {}]   ;;  %s1501_s6 = inlined_call_operand.hbm [shape: f32[1,8,128], index: 6, kind: output, shape index: {}]  }
   0x1   :  { %1503 = sst [smem:[#allocation24_spill]] %s1496_s1 }
   0x2   :  { %1504 = sst [smem:[#allocation25_spill]] %s1498_s3 }
   0x3   :  { %11 = vsyncpa [#allocation6], 0 }
   0x4   :  { %13 = vsyncpa [#allocation6 + $0x1], 0 }
   0x5   :  { %14 = vsyncpa [#allocation9], 0 }
   0x6   :  { %16 = vsyncpa [#allocation9 + $0x1], 0 }
   0x7   :  { %17 = vsyncpa [#allocation12], 0 }
   0x8   :  { %19 = vsyncpa [#allocation12 + $0x1], 0 }
   0x9   :  { %20 = vsyncpa [#allocation15], 0 }
   0xa   :  { %22 = vsyncpa [#allocation15 + $0x1], 0 }
   0xb   :  { %23 = vsyncpa [#allocation7], 0  ;;  %s1233_s21 = smov 0   ;;  %s1235_s22 = smov 0  }
   0xc   :  { %s1237_s23 = smov 0   ;;  %s1239_s24 = smov 0  }
   0xd LB: > { %1505 = sst [smem:[#allocation22_spill]] %s1190_s23  ;;  %s1252_s25 = sadd.s32 4294967295, %s1194_s24   ;;  %s1194_s24 = sphi %s1239_s24, %s1517_s24   ;;  %s1190_s23 = sphi %s1237_s23, %s1514_s23   ;;  %s1186_s22 = sphi %s1235_s22, %s1516_s22   ;;  %s1182_s21 = sphi %s1233_s21, %s1515_s21  }
   0xe   : > { %s1255_s26 = sadd.s32 1, %s1194_s24   ;;  %s36_s28 = sadd.s32 1, %s1190_s23 }
   0xf   : > { %s33_s27 = ssub.s32 %s1194_s24, %s1255_s26  ;;  %p43_p1 = scmp.ne.s32.totalorder %s1190_s23, %s1186_s22 }
  0x10   : > { %p34_p0 = scmp.eq.s32.totalorder %s33_s27, 0  ;;  %p44_p2 = scmp.eq.s32.totalorder %s1194_s24, 0 }
  0x11   : > { %p49_p3 = scmp.ne.s32.totalorder %s1186_s22, %s1182_s21  ;;  %p50_p5 = scmp.eq.s32.totalorder %s1252_s25, 0 }
  0x12   : > { %s1265_s29 = scalar_select %p34_p0, %s1190_s23, %s36_s28  }
  0x13   : > { %p45_p4 = por %p44_p2, %p43_p1  ;;  %p883_p6 = scmp.lt.s32.totalorder %s1194_s24, 3 }
  0x14   : > { %1506 = sst [smem:[#allocation23_spill]] %s1265_s29  ;;  %p1269_p7 = por %p50_p5, %p49_p3 }
  0x15   : > { %s1274_s7 = sand.u32 1, %s1190_s23   ;;  %s1280_s9 = sshll.u32 %s1194_s24, 3 }
  0x16   : > { %s1277_s8 = sshll.u32 %s1274_s7, 3  ;;  %p1282_p8 = pnand %p883_p6, %p45_p4 }
  0x17   : > { %s243_s11 = sand.u32 1, %s1194_s24   ;;  %s1509_s1 = sld [smem:[#allocation24_spill]] }
  0x18   : > { %s247_s16 = scalar_lea.vmem [#allocation8], %s1277_s8  ;;  %s1294_s18 = scalar_lea.sflag [#allocation9], %s243_s11 }
  0x19   : > { %s255_s17 = sshll.u32 %s247_s16, 4  ;;  %p1298_p10 = pneg %p1282_p8  ;;  %s256_s17 = int_to_ptr.vmem [resolvable:$true] %s255_s17 }
  0x1d   : > { %s251_s14 = scalar_lea.hbm %s1509_s1, %s1280_s9  ;;  %s943_s12 = scalar_lea.hbm %s1509_s1, 24 }
  0x1e   : > { %s253_s15 = sshll.u32 %s251_s14, 4  ;;  %s254_s15 = int_to_ptr.hbm [resolvable:$true] %s253_s15 }
  0x1f   : > { %s936_s19 = sshra.s32 %s254_s15, 4  ;;  %s937_s19 = int_to_ptr.hbm [resolvable:$true] %s936_s19 }
  0x20   : > { %s938_s20 = scalar_lea.hbm %s937_s19, 8  ;;  %p944_p13 = scmp.lt.s32.totalorder %s937_s19, %s1509_s1 }
  0x21   : > { %p939_p9 = scmp.ne.s32.totalorder %s937_s19, %s938_s20  ;;  %p945_p0 = scmp.lt.s32.totalorder %s943_s12, %s938_s20 }
  0x23   : > { %p941_p11 = pnand %p1298_p10, %p939_p9  ;;  %p946_p1 = por %p945_p0, %p944_p13 }
  0x25   : > { %p942_p12 = pneg %p941_p11 }
  0x27   : > { %p947_p2 = pnand %p946_p1, %p942_p12 }
  0x29   : > { %950 = shalt.err (!%p947_p2)
}
  0x2a   : > { %870 = dma.hbm_to_vmem [thread:$0]  (!%p1282_p8), %s254_s15, 128, %s256_s17, %s1294_s18  }
  0x2b   : > { %p827_p3 = scmp.ge.s32.totalorder %s1194_s24, 1  ;;  %p336_p4 = scmp.lt.s32.totalorder %s1194_s24, 4 }
  0x2c   : > { %s1512_s3 = sld [smem:[#allocation25_spill]]  ;;  %s285_s12 = scalar_lea.vmem [#allocation11], %s1277_s8 }
  0x2d   : > { %p1315_p5 = pnand %p827_p3, %p336_p4  ;;  %s293_s13 = sshll.u32 %s285_s12, 4  ;;  %s294_s13 = int_to_ptr.vmem [resolvable:$true] %s293_s13 }
  0x2e   : > { %s1326_s14 = scalar_lea.sflag [#allocation12], %s243_s11 }
  0x32   : > { %s289_s27 = scalar_lea.hbm %s1512_s3, %s1280_s9  ;;  %s973_s19 = scalar_lea.hbm %s1512_s3, 24 }
  0x33   : > { %s291_s28 = sshll.u32 %s289_s27, 4  ;;  %s292_s28 = int_to_ptr.hbm [resolvable:$true] %s291_s28 }
  0x34   : > { %s966_s1 = sshra.s32 %s292_s28, 4  ;;  %s967_s1 = int_to_ptr.hbm [resolvable:$true] %s966_s1 }
  0x35   : > { %s968_s15 = scalar_lea.hbm %s967_s1, 8  ;;  %p974_p12 = scmp.lt.s32.totalorder %s967_s1, %s1512_s3 }
  0x36   : > { %p969_p6 = scmp.ne.s32.totalorder %s967_s1, %s968_s15  ;;  %p975_p13 = scmp.lt.s32.totalorder %s973_s19, %s968_s15 }
  0x38   : > { %p971_p9 = pnand %p969_p6, %p1298_p10  ;;  %p976_p0 = por %p975_p13, %p974_p12 }
  0x3a   : > { %p972_p11 = pneg %p971_p9 }
  0x3c   : > { %p977_p1 = pnand %p976_p0, %p972_p11 }
  0x3e   : > { %980 = shalt.err (!%p977_p1)
}
  0x3f   : > { %876 = dma.hbm_to_vmem [thread:$0]  (!%p1282_p8), %s292_s28, 128, %s294_s13, %s1326_s14  }
  0x40   : > { %s232_s29 = scalar_lea.hbm %s1495_s0, %s1280_s9  ;;  %s228_s12 = scalar_lea.vmem [#allocation5], %s1277_s8 }
  0x41   : > { %s236_s17 = sshll.u32 %s228_s12, 4  ;;  %s234_s20 = sshll.u32 %s232_s29, 4  ;;  %s237_s17 = int_to_ptr.vmem [resolvable:$true] %s236_s17  ;;  %s235_s20 = int_to_ptr.hbm [resolvable:$true] %s234_s20 }
  0x42   : > { %s225_s1 = scalar_lea.sflag [#allocation6], %s1274_s7  ;;  %s996_s15 = sshra.s32 %s235_s20, 4  ;;  %s997_s15 = int_to_ptr.hbm [resolvable:$true] %s996_s15 }
  0x43   : > { %s998_s19 = scalar_lea.hbm %s997_s15, 8  ;;  %s1003_s28 = scalar_lea.hbm %s1495_s0, 24 }
  0x44   : > { %p999_p2 = scmp.ne.s32.totalorder %s997_s15, %s998_s19  ;;  %p1004_p6 = scmp.lt.s32.totalorder %s997_s15, %s1495_s0 }
  0x45   : > { %p1005_p9 = scmp.lt.s32.totalorder %s1003_s28, %s998_s19 }
  0x46   : > { %p1001_p3 = pnand %p999_p2, %p1298_p10 }
  0x47   : > { %p1006_p11 = por %p1005_p9, %p1004_p6 }
  0x48   : > { %p1002_p4 = pneg %p1001_p3 }
  0x4a   : > { %p1007_p12 = pnand %p1006_p11, %p1002_p4 }
  0x4c   : > { %1010 = shalt.err (!%p1007_p12)
}
  0x4d   : > { %867 = dma.hbm_to_vmem [thread:$0]  (!%p1282_p8), %s235_s20, 128, %s237_s17, %s225_s1  }
  0x4e   : > { %s270_s12 = scalar_lea.hbm %s1497_s2, %s1280_s9  ;;  %s266_s3 = scalar_lea.vmem [#allocation10], %s1277_s8 }
  0x4f   : > { %s274_s27 = sshll.u32 %s266_s3, 4  ;;  %s272_s23 = sshll.u32 %s270_s12, 4  ;;  %s275_s27 = int_to_ptr.vmem [resolvable:$true] %s274_s27  ;;  %s273_s23 = int_to_ptr.hbm [resolvable:$true] %s272_s23 }
  0x50   : > { %s1026_s15 = sshra.s32 %s273_s23, 4  ;;  %s1033_s17 = scalar_lea.hbm %s1497_s2, 24  ;;  %s1027_s15 = int_to_ptr.hbm [resolvable:$true] %s1026_s15 }
  0x51   : > { %s1028_s19 = scalar_lea.hbm %s1027_s15, 8  ;;  %p1034_p2 = scmp.lt.s32.totalorder %s1027_s15, %s1497_s2 }
  0x52   : > { %p1029_p13 = scmp.ne.s32.totalorder %s1027_s15, %s1028_s19  ;;  %p1035_p3 = scmp.lt.s32.totalorder %s1033_s17, %s1028_s19 }
  0x54   : > { %p1031_p0 = pnand %p1029_p13, %p1298_p10  ;;  %p1036_p4 = por %p1035_p3, %p1034_p2 }
  0x56   : > { %p1032_p1 = pneg %p1031_p0 }
  0x58   : > { %p1037_p6 = pnand %p1036_p4, %p1032_p1 }
  0x5a   : > { %1040 = shalt.err (!%p1037_p6)
}
  0x5b   : > { %873 = dma.hbm_to_vmem [thread:$0]  (!%p1282_p8), %s273_s23, 128, %s275_s27, %s1294_s18  }
  0x5c   : > { %s308_s29 = scalar_lea.hbm %s1499_s4, %s1280_s9  ;;  %s304_s12 = scalar_lea.vmem [#allocation13], %s1277_s8 }
  0x5d   : > { %s312_s3 = sshll.u32 %s304_s12, 4  ;;  %s310_s28 = sshll.u32 %s308_s29, 4  ;;  %s313_s3 = int_to_ptr.vmem [resolvable:$true] %s312_s3  ;;  %s311_s28 = int_to_ptr.hbm [resolvable:$true] %s310_s28 }
  0x5e   : > { %s1056_s15 = sshra.s32 %s311_s28, 4  ;;  %s1063_s23 = scalar_lea.hbm %s1499_s4, 24  ;;  %s1057_s15 = int_to_ptr.hbm [resolvable:$true] %s1056_s15 }
  0x5f   : > { %s1058_s19 = scalar_lea.hbm %s1057_s15, 8  ;;  %p1064_p13 = scmp.lt.s32.totalorder %s1057_s15, %s1499_s4 }
  0x60   : > { %p1059_p9 = scmp.ne.s32.totalorder %s1057_s15, %s1058_s19  ;;  %p1065_p0 = scmp.lt.s32.totalorder %s1063_s23, %s1058_s19 }
  0x62   : > { %p1061_p11 = pnand %p1059_p9, %p1298_p10  ;;  %p1066_p1 = por %p1065_p0, %p1064_p13 }
  0x64   : > { %p1062_p12 = pneg %p1061_p11 }
  0x66   : > { %p1067_p2 = pnand %p1066_p1, %p1062_p12 }
  0x68   : > { %1070 = shalt.err (!%p1067_p2)
}
  0x69   : > { %879 = dma.hbm_to_vmem [thread:$0]  (!%p1282_p8), %s311_s28, 128, %s313_s3, %s1326_s14  }
  0x6a   : > { %s327_s24 = scalar_lea.hbm %s1500_s5, %s1280_s9  ;;  %s323_s29 = scalar_lea.vmem [#allocation14], %s1277_s8 }
  0x6b   : > { %s329_s11 = sshll.u32 %s327_s24, 4  ;;  %s331_s12 = sshll.u32 %s323_s29, 4  ;;  %s330_s11 = int_to_ptr.hbm [resolvable:$true] %s329_s11  ;;  %s332_s12 = int_to_ptr.vmem [resolvable:$true] %s331_s12 }
  0x6c   : > { %s320_s15 = scalar_lea.sflag [#allocation15], %s1274_s7  ;;  %s1086_s19 = sshra.s32 %s330_s11, 4  ;;  %s1087_s19 = int_to_ptr.hbm [resolvable:$true] %s1086_s19 }
  0x6d   : > { %s1088_s13 = scalar_lea.hbm %s1087_s19, 8  ;;  %s1093_s14 = scalar_lea.hbm %s1500_s5, 24 }
  0x6e   : > { %p1089_p3 = scmp.ne.s32.totalorder %s1087_s19, %s1088_s13  ;;  %p1094_p9 = scmp.lt.s32.totalorder %s1087_s19, %s1500_s5 }
  0x6f   : > { %p1095_p11 = scmp.lt.s32.totalorder %s1093_s14, %s1088_s13 }
  0x70   : > { %p1091_p4 = pnand %p1089_p3, %p1298_p10 }
  0x71   : > { %p1096_p12 = por %p1095_p11, %p1094_p9 }
  0x72   : > { %p1092_p6 = pneg %p1091_p4 }
  0x74   : > { %p1097_p13 = pnand %p1096_p12, %p1092_p6 }
  0x76   : > { %1100 = shalt.err (!%p1097_p13)
}
  0x77   : > { %882 = dma.hbm_to_vmem [thread:$0]  (!%p1282_p8), %s330_s11, 128, %s332_s12, %s320_s15  }
  0x78   : > { %340 = sbr.rel (%p1315_p5) target bundleno = 439 (0x1b7), region = 44  ;;  %s342_s7 = sand.u32 (!%p1315_p5), 1, %s1186_s22  }
  0x79   : > { %s1406_s8 = sshll.u32 (!%p1315_p5), %s342_s7, 3  ;;  %s343_s9 = scalar_lea.sflag (!%p1315_p5), [#allocation6], %s342_s7 }
  0x7a   : > { %s346_s21 = scalar_lea.vmem (!%p1315_p5), [#allocation5], %s1406_s8 }
  0x7d   : > { %1161 = dma.done.wait (%p1269_p7), %s343_s9, 128  }
  0x7e   : > { %1163 = vsyncadd (%p1269_p7), %s343_s9, 4294967168  ;;  %s352_s10 = sand.u32 1, %s1252_s25   ;;  %s356_s16 = scalar_lea.vmem [#allocation8], %s1406_s8 }
  0x7f   : > { %s353_s18 = scalar_lea.sflag [#allocation9], %s352_s10 }
  0x80   : > { %1165 = dma.done.wait (%p1269_p7), %s353_s18, 256  }
  0x81   : > { %1167 = vsyncadd (%p1269_p7), %s353_s18, 4294967040  ;;  %s366_s27 = scalar_lea.vmem [#allocation10], %s1406_s8  ;;  %s373_s20 = scalar_lea.sflag [#allocation12], %s352_s10 }
  0x82   : > { %s376_s1 = scalar_lea.vmem [#allocation11], %s1406_s8 }
  0x83   : > { %1169 = dma.done.wait (%p1269_p7), %s373_s20, 256  }
  0x84   : > { %1171 = vsyncadd (%p1269_p7), %s373_s20, 4294967040  ;;  %s386_s24 = scalar_lea.vmem [#allocation13], %s1406_s8  ;;  %s393_s11 = scalar_lea.sflag [#allocation15], %s342_s7 }
  0x85   : > { %s396_s29 = scalar_lea.vmem [#allocation14], %s1406_s8 }
  0x86   : > { %1173 = dma.done.wait (%p1269_p7), %s393_s11, 128  }
  0x87   : > { %1175 = vsyncadd (%p1269_p7), %s393_s11, 4294967168  ;;  %p834_p8 = scmp.ne.s32.totalorder %s1252_s25, 0 }
  0x89   : > { %449 = sbr.rel (%p834_p8) target bundleno = 146 (0x92), region = 72 }
  0x8e   : > { %v1196_v0 = vmov 0.0  }
  0x8f   : > { %450 = vst [vmem:[#allocation2] sm:$0x1] %v1196_v0 }
  0x90   : > { %451 = vst [vmem:[#allocation3] sm:$0x1] %v1196_v0 }
  0x91   : > { %452 = vst [vmem:[#allocation4] sm:$0x1] %v1196_v0 }
  0x92 PF: > { %p835_p10 = scmp.eq.s32.totalorder %s1252_s25, 2 }
  0x94   : > { %457 = sbr.rel (%p835_p10) target bundleno = 191 (0xbf), region = 76 }
  0x99   : > { %v458_v1 = vld [vmem:[%s346_s21] sm:$0xff]  ;;  %v503_v6 = vld [vmem:[%s396_s29] sm:$0xff] }
  0x9a   : > { %920 = vlog2.f32 %v458_v1  ;;  %v463_v2 = vsub.f32 1.0, %v458_v1  ;;  %v480_v3 = vld [vmem:[%s366_s27] sm:$0xff]  ;;  %vm504_vm0 = vcmp.lt.f32.partialorder %v503_v6, 10.0  ;;  %v459_v26 = vld [vmem:[%s356_s16] sm:$0xff] }
  0x9b   : > { %v502_v4 = vld [vmem:[%s386_s24] sm:$0xff]  ;;  %922 = vlog2.f32 %v480_v3  ;;  %v485_v5 = vsub.f32 1.0, %v480_v3  ;;  %v481_v29 = vld [vmem:[%s376_s1] sm:$0xff] }
  0x9c   : > { %v507_v7 = vsub.f32 10.0, %v502_v4  ;;  %924 = vlog2.f32 %v463_v2  ;;  %v505_v8 = vsub.f32 %v502_v4, %v503_v6  ;;  %v510_v35 = vld [vmem:[#allocation4] sm:$0x1]  ;;  %v471_v51 = vld [vmem:[#allocation2] sm:$0x1] }
  0x9d   : > { %926 = vlog2.f32 %v485_v5  ;;  %v493_v54 = vld [vmem:[#allocation3] sm:$0x1] }
  0x9e   : > { %v508_v9 = vmax.f32 %v507_v7, 0.0  ;;  %v506_v10 = vand.u32 2147483647, %v505_v8 }
  0xa0   : > { %v921_v11 = vpop.eup %920  ;;  %v509_v12 = vsel %vm504_vm0, %v506_v10, %v508_v9 }
  0xa1   : > { %v923_v13 = vpop.eup %922  ;;  %v461_v14 = vmul.f32 0.6931472, %v921_v11  ;;  %v511_v15 = vrot.slane %v509_v12, 4 }
  0xa2   : > { %v925_v16 = vpop.eup %924  ;;  %v483_v17 = vmul.f32 0.6931472, %v923_v13 }
  0xa3   : > { %v927_v18 = vpop.eup %926  ;;  %v462_v19 = vmax.f32 %v461_v14, -100.0  ;;  %v465_v20 = vmul.f32 0.6931472, %v925_v16  ;;  %v512_v21 = vadd.f32 %v511_v15, %v509_v12 }
  0xa4   : > { %v484_v22 = vmax.f32 %v483_v17, -100.0  ;;  %v487_v23 = vmul.f32 0.6931472, %v927_v18 }
  0xa5   : > { %v466_v24 = vmax.f32 %v465_v20, -100.0  ;;  %v513_v25 = vrot.slane %v512_v21, 2 }
  0xa6   : > { %v488_v27 = vmax.f32 %v487_v23, -100.0 }
  0xa7   : > { %v467_v28 = vsub.f32 %v462_v19, %v466_v24  ;;  %v514_v30 = vadd.f32 %v513_v25, %v512_v21 }
  0xa8   : > { %v489_v31 = vsub.f32 %v484_v22, %v488_v27 }
  0xa9   : > { %v468_v32 = vmul.f32 %v467_v28, %v459_v26  ;;  %v515_v33 = vrot.slane %v514_v30, 1 }
  0xaa   : > { %v490_v34 = vmul.f32 %v489_v31, %v481_v29 }
  0xab   : > { %v469_v36 = vadd.f32 %v468_v32, %v466_v24  ;;  %v516_v37 = vadd.f32 %v515_v33, %v514_v30 }
  0xac   : > { %v491_v38 = vadd.f32 %v490_v34, %v488_v27 }
  0xad   : > { %v470_v39 = vsub.f32 0.0, %v469_v36  ;;  %v517_v40 = vadd.f32 %v516_v37, %v510_v35 }
  0xae   : > { %v492_v41 = vsub.f32 0.0, %v491_v38 }
  0xaf   : > { %v472_v42 = vrot.slane %v470_v39, 4  ;;  %518 = vst [vmem:[#allocation4] sm:$0x1] %v517_v40 }
  0xb0   : > { %v494_v43 = vrot.slane %v492_v41, 4 }
  0xb1   : > { %v473_v44 = vadd.f32 %v472_v42, %v470_v39 }
  0xb2   : > { %v495_v45 = vadd.f32 %v494_v43, %v492_v41 }
  0xb3   : > { %v474_v46 = vrot.slane %v473_v44, 2 }
  0xb4   : > { %v496_v47 = vrot.slane %v495_v45, 2 }
  0xb5   : > { %v475_v48 = vadd.f32 %v474_v46, %v473_v44 }
  0xb6   : > { %v497_v49 = vadd.f32 %v496_v47, %v495_v45 }
  0xb7   : > { %v476_v50 = vrot.slane %v475_v48, 1 }
  0xb8   : > { %v498_v52 = vrot.slane %v497_v49, 1 }
  0xb9   : > { %v477_v53 = vadd.f32 %v476_v50, %v475_v48 }
  0xba   : > { %v499_v55 = vadd.f32 %v498_v52, %v497_v49 }
  0xbb   : > { %v478_v56 = vadd.f32 %v477_v53, %v471_v51 }
  0xbc   : > { %v500_v57 = vadd.f32 %v499_v55, %v493_v54 }
  0xbd   : > { %479 = vst [vmem:[#allocation2] sm:$0x1] %v478_v56 }
  0xbe   : > { %501 = vst [vmem:[#allocation3] sm:$0x1] %v500_v57 }
  0xbf PF: > { %p836_p7 = scmp.ne.s32.totalorder %s1252_s25, 2 }
  0xc0   : > { %s837_s30 = sshll.u32 (!%p836_p7), %s1252_s25, 3 }
  0xc1   : > { %521 = sbr.rel (%p836_p7) target bundleno = 434 (0x1b2), region = 80 }
  0xc6   : > { %v523_v58 = vlaneseq  ;;  %v528_v59 = vld [vmem:[%s346_s21] sm:$0xff]  ;;  %v525_v60 = vstv %s837_s30  ;;  %v577_v63 = vld [vmem:[%s396_s29] sm:$0xff]  ;;  %vm597_vm3 = vcmask 1040384  }
  0xc7   : > { %928 = vlog2.f32 %v528_v59  ;;  %v533_v61 = vsub.f32 1.0, %v528_v59  ;;  %v576_v62 = vld [vmem:[%s386_s24] sm:$0xff]  ;;  %vm578_vm1 = vcmp.lt.f32.partialorder %v577_v63, 10.0  ;;  %v529_v23 = vld [vmem:[%s356_s16] sm:$0xff] }
  0xc8   : > { %v553_v0 = vld [vmem:[%s366_s27] sm:$0xff]  ;;  %v1458_v1 = vshrl.u32 %v523_v58, 7  ;;  %v579_v2 = vsub.f32 %v576_v62, %v577_v63  ;;  %v581_v3 = vsub.f32 10.0, %v576_v62  ;;  %v554_v28 = vld [vmem:[%s376_s1] sm:$0xff] }
  0xc9   : > { %930 = vlog2.f32 %v533_v61  ;;  %v558_v4 = vsub.f32 1.0, %v553_v0  ;;  %v585_v32 = vld [vmem:[#allocation4] sm:$0x1]  ;;  %v544_v53 = vld [vmem:[#allocation2] sm:$0x1] }
  0xca   : > { %v526_v5 = vadd.s32 %v525_v60, %v1458_v1  ;;  %v580_v6 = vand.u32 2147483647, %v579_v2  ;;  %v582_v7 = vmax.f32 %v581_v3, 0.0  ;;  %932 = vlog2.f32 %v553_v0  ;;  %v567_v56 = vld [vmem:[#allocation3] sm:$0x1] }
  0xcb   : > { %934 = vlog2.f32 %v558_v4  ;;  %vm608_vm4 = vcmp.eq.s32.totalorder %v1458_v1, 0 }
  0xcc   : > { %vm527_vm2 = vcmp.lt.s32.totalorder %v526_v5, 20  ;;  %v583_v8 = vsel %vm578_vm1, %v580_v6, %v582_v7 }
  0xcd   : > { %v929_v9 = vpop.eup %928  ;;  %v584_v10 = vsel %vm527_vm2, %v583_v8, 0.0 }
  0xce   : > { %v531_v11 = vmul.f32 0.6931472, %v929_v9  ;;  %v586_v12 = vrot.slane %v584_v10, 4 }
  0xcf   : > { %v931_v13 = vpop.eup %930 }
  0xd0   : > { %v933_v14 = vpop.eup %932  ;;  %v532_v15 = vmax.f32 %v531_v11, -100.0  ;;  %v535_v16 = vmul.f32 0.6931472, %v931_v13  ;;  %v587_v17 = vadd.f32 %v586_v12, %v584_v10 }
  0xd1   : > { %v935_v18 = vpop.eup %934  ;;  %v556_v19 = vmul.f32 0.6931472, %v933_v14 }
  0xd2   : > { %v536_v20 = vmax.f32 %v535_v16, -100.0  ;;  %v588_v21 = vrot.slane %v587_v17, 2  ;;  %v560_v22 = vmul.f32 0.6931472, %v935_v18 }
  0xd3   : > { %v557_v24 = vmax.f32 %v556_v19, -100.0 }
  0xd4   : > { %v537_v25 = vsub.f32 %v532_v15, %v536_v20  ;;  %v589_v26 = vadd.f32 %v588_v21, %v587_v17  ;;  %v561_v27 = vmax.f32 %v560_v22, -100.0 }
  0xd6   : > { %v538_v29 = vmul.f32 %v537_v25, %v529_v23  ;;  %v590_v30 = vrot.slane %v589_v26, 1  ;;  %v562_v31 = vsub.f32 %v557_v24, %v561_v27  ;;  %v595_v23 = vand.u32 127, %v523_v58 }
  0xd8   : > { %v539_v33 = vadd.f32 %v538_v29, %v536_v20  ;;  %v591_v34 = vadd.f32 %v590_v30, %v589_v26  ;;  %v563_v35 = vmul.f32 %v562_v31, %v554_v28  ;;  %vm609_vm5 = vcmp.eq.s32.totalorder %v595_v23, 0 }
  0xd9   : > { %vm624_vm6 = vcmp.eq.s32.totalorder %v595_v23, 1  ;;  %vm639_vm7 = vcmp.eq.s32.totalorder %v595_v23, 2  ;;  %vm610_vm8 = vmand %vm608_vm4, %vm609_vm5 }
  0xda   : > { %v540_v36 = vsub.f32 0.0, %v539_v33  ;;  %v592_v37 = vadd.f32 %v591_v34, %v585_v32  ;;  %v564_v38 = vadd.f32 %v563_v35, %v561_v27  ;;  %vm625_vm9 = vmand %vm608_vm4, %vm624_vm6 }
  0xdb   : > { %vm640_vm10 = vmand %vm608_vm4, %vm639_vm7 }
  0xdc   : > { %v543_v39 = vsel %vm527_vm2, %v540_v36, 0.0  ;;  %593 = vst [vmem:[#allocation4] sm:$0x1] %v592_v37  ;;  %v565_v40 = vsub.f32 0.0, %v564_v38 }
  0xdd   : > { %v545_v41 = vrot.slane %v543_v39, 4 }
  0xde   : > { %v566_v42 = vsel %vm527_vm2, %v565_v40, 0.0 }
  0xdf   : > { %v546_v43 = vadd.f32 %v545_v41, %v543_v39  ;;  %v568_v44 = vrot.slane %v566_v42, 4 }
  0xe1   : > { %v547_v45 = vrot.slane %v546_v43, 2  ;;  %v569_v46 = vadd.f32 %v568_v44, %v566_v42 }
  0xe3   : > { %v548_v47 = vadd.f32 %v547_v45, %v546_v43  ;;  %v628_v48 = vld [vmem:[#allocation4] sm:$0x1]  ;;  %v570_v49 = vrot.slane %v569_v46, 2 }
  0xe4   : > { %v629_v50 = vsel %vm597_vm3, %v628_v48, 0.0 }
  0xe5   : > { %v549_v51 = vrot.slane %v548_v47, 1  ;;  %630 = vadd.xlane.f32.xlu1 %v629_v50  ;;  %v571_v52 = vadd.f32 %v570_v49, %v569_v46 }
  0xe7   : > { %v550_v54 = vadd.f32 %v549_v51, %v548_v47  ;;  %v572_v55 = vrot.slane %v571_v52, 1 }
  0xe9   : > { %v551_v57 = vadd.f32 %v550_v54, %v544_v53  ;;  %v573_v59 = vadd.f32 %v572_v55, %v571_v52 }
  0xeb   : > { %552 = vst [vmem:[#allocation2] sm:$0x1] %v551_v57  ;;  %v574_v60 = vadd.f32 %v573_v59, %v567_v56 }
  0xed   : > { %575 = vst [vmem:[#allocation3] sm:$0x1] %v574_v60 }
  0xf2   : > { %v596_v61 = vld [vmem:[#allocation2] sm:$0x1] }
  0xf3   : > { %v598_v62 = vsel %vm597_vm3, %v596_v61, 0.0 }
  0xf4   : > { %599 = vadd.xlane.f32.xlu0 %v598_v62  ;;  %v613_v63 = vld [vmem:[#allocation3] sm:$0x1] }
  0xf5   : > { %v614_v0 = vsel %vm597_vm3, %v613_v63, 0.0 }
  0xfc   : > { %615 = vadd.xlane.f32.xlu0 %v614_v0 }
 0x158   : > { %v631_v2 = vpop.xlane.xlu1 %630 }
 0x159   : > { %v632_v4 = vrot.slane %v631_v2, 4 }
 0x15b   : > { %v633_v7 = vadd.f32 %v632_v4, %v631_v2 }
 0x15d   : > { %v634_v10 = vrot.slane %v633_v7, 2 }
 0x15f   : > { %v635_v16 = vadd.f32 %v634_v10, %v633_v7 }
 0x161   : > { %v636_v19 = vrot.slane %v635_v16, 1 }
 0x163   : > { %v637_v22 = vadd.f32 %v636_v19, %v635_v16 }
 0x167   : > { %v600_v3 = vpop.xlane.xlu0 %599 }
 0x168   : > { %v601_v5 = vrot.slane %v600_v3, 4 }
 0x16a   : > { %v602_v6 = vadd.f32 %v601_v5, %v600_v3 }
 0x16c   : > { %v603_v8 = vrot.slane %v602_v6, 2 }
 0x16e   : > { %v604_v9 = vadd.f32 %v603_v8, %v602_v6 }
 0x16f   : > { %v616_v11 = vpop.xlane.xlu0 %615 }
 0x170   : > { %v617_v12 = vrot.slane %v616_v11, 4  ;;  %v605_v13 = vrot.slane %v604_v9, 1 }
 0x172   : > { %v618_v14 = vadd.f32 %v617_v12, %v616_v11  ;;  %v606_v15 = vadd.f32 %v605_v13, %v604_v9 }
 0x174   : > { %v619_v17 = vrot.slane %v618_v14, 2  ;;  %842 = vpush %v606_v15 }
 0x176   : > { %v620_v18 = vadd.f32 %v619_v17, %v618_v14 }
 0x178   : > { %v621_v20 = vrot.slane %v620_v18, 1 }
 0x17a   : > { %v622_v21 = vadd.f32 %v621_v20, %v620_v18 }
 0x17c   : > { %844 = vpush %v622_v21 }
 0x17d   : > { %846 = vpush %v637_v22 }
 0x1a5   : > { %s843_s12 = spop %842 }
 0x1a6   : > { %v611_v24 = vstv %s843_s12 }
 0x1a7   : > { %v612_v25 = vsel %vm610_vm8, %v611_v24, 0.0 }
 0x1ad   : > { %s845_s15 = spop %844 }
 0x1ae   : > { %v626_v26 = vstv %s845_s15  ;;  %s847_s19 = spop %846 }
 0x1af   : > { %v627_v27 = vsel %vm625_vm9, %v626_v26, %v612_v25  ;;  %v641_v28 = vstv %s847_s19 }
 0x1b0   : > { %v642_v29 = vsel %vm640_vm10, %v641_v28, %v627_v27 }
 0x1b1   : > { %643 = vst [vmem:[#allocation16] sm:$0xff] %v642_v29 }
 0x1b2 PF: > { %s652_s23 = sshll.u32 %s1501_s6, 4  ;;  %s1197_s14 = smov [#allocation16]   ;;  %s653_s23 = int_to_ptr.hbm [resolvable:$true] %s652_s23 }
 0x1b3   : > { %s650_s3 = sshll.u32 %s1197_s14, 4  ;;  %s651_s3 = int_to_ptr.vmem [resolvable:$true] %s650_s3 }
 0x1b4   : > { %861 = dma.vmem_to_hbm [thread:$0]  (%p835_p10), %s651_s3, 128, %s653_s23, [#allocation7]  }
 0x1b5   : > { %1177 = dma.done.wait (%p835_p10), [#allocation7], 128  }
 0x1b6   : > { %1179 = vsyncadd (%p835_p10), [#allocation7], 4294967168 }
 0x1b7 PF: > { %s1513_s28 = sld [smem:[#allocation22_spill]]  ;;  %p26_p5 = scmp.ge.s32.totalorder %s1255_s26, 5  }
 0x1b8   : > { %s1514_s23 = sld [smem:[#allocation23_spill]]  ;;  %s1515_s21 = smov %s1186_s22 }
 0x1b9   : > { %s1517_s24 = smov %s1255_s26  ;;  %28 = sbr.rel (!%p26_p5) target bundleno = 13 (0xd), region = 154 }
 0x1bd   : > { %s1516_s22 = smov %s1513_s28 }
 0x1be   :  { %666 = vsyncpa [#allocation6], 1 }
 0x1bf   :  { %668 = vsyncpa [#allocation6 + $0x1], 1 }
 0x1c0   :  { %669 = vsyncpa [#allocation9], 1 }
 0x1c1   :  { %671 = vsyncpa [#allocation9 + $0x1], 1 }
 0x1c2   :  { %672 = vsyncpa [#allocation12], 1 }
 0x1c3   :  { %674 = vsyncpa [#allocation12 + $0x1], 1 }
 0x1c4   :  { %675 = vsyncpa [#allocation15], 1 }
 0x1c5   :  { %677 = vsyncpa [#allocation15 + $0x1], 1 }
 0x1c6   :  { %678 = vsyncpa [#allocation7], 1 }
 0x1c7   :  { %680 = vsyncpa [#allocation7 + $0x1], 1 }

</bundles_post_ra>
